<compile_context>
chip_gen: v7x
topology: tpu7x:2x2x1
jax: 0.10.0
libtpu: 0.0.40
codegen_flags: <defaults>
</compile_context>

<pallas_src>
import functools

import jax
import jax.numpy as jnp
from jax import lax
from jax.experimental import pallas as pl
from jax.experimental.pallas import tpu as pltpu


# --------------------------------------------------------------------------
# Kernel: one seq-tile of the cos/sin rotary tables
# --------------------------------------------------------------------------
def _rope_cache_kernel(freq_ref, cos_ref, sin_ref, *, tile_s, use_half):
    i = pl.program_id(0)
    ts, dim = cos_ref.shape                       # block shape (tile_s, dim)
    d2 = dim // 2

    # cat([freqs, freqs]) symmetry: when the half-width is itself lane-dense
    # (dim % 256 == 0) compute cos/sin only on the first half and write the
    # result to both lane halves -> halves the transcendental work.
    width = d2 if use_half else dim
    freqs = freq_ref[:, :width]                   # (1, width), fp32

    # Absolute position of every row in this tile (in-kernel iota, no HBM
    # input).  int32 -> f32 is exact for positions < 2^24, far beyond any
    # realistic seq_len.
    pos = (lax.broadcasted_iota(jnp.int32, (ts, width), 0)
           + i * tile_s).astype(jnp.float32)      # (ts, width)

    angle = pos * freqs                           # fp32 angles
    c = jnp.cos(angle).astype(cos_ref.dtype)
    s = jnp.sin(angle).astype(sin_ref.dtype)

    if use_half:
        cos_ref[:, :d2] = c
        cos_ref[:, d2:] = c
        sin_ref[:, :d2] = s
        sin_ref[:, d2:] = s
    else:
        cos_ref[...] = c
        sin_ref[...] = s


# --------------------------------------------------------------------------
# "Buffer" construction (mirrors RotaryEmbedding.__init__ / register_buffer)
# --------------------------------------------------------------------------
def make_rotary_freqs(dim, base=10000.0):
    """Returns cat([inv_freq, inv_freq]) as a lane-dense (1, dim) row."""
    inv_freq = 1.0 / (base ** (jnp.arange(0, dim, 2, dtype=jnp.float32) / dim))
    return jnp.concatenate([inv_freq, inv_freq], axis=0).reshape(1, dim)


# --------------------------------------------------------------------------
# Tile selection: sublane-aligned, VMEM-friendly, >= 2 grid steps when useful
# --------------------------------------------------------------------------
def _choose_tile_s(seq_len, tile_s_max, min_steps=2):
    if seq_len <= 16:
        # Tiny: single full-extent block (block dim == array dim is always legal).
        return seq_len
    # Aim for at least `min_steps` grid steps (so v7x's two TensorCores both
    # get work), rounded up to a sublane multiple of 8, capped by tile_s_max.
    target = 8 * pl.cdiv(pl.cdiv(seq_len, min_steps), 8)
    return max(8, min(tile_s_max, target))


# --------------------------------------------------------------------------
# Wrapper: RotaryEmbedding.forward(x, seq_len)
# --------------------------------------------------------------------------
def rotary_embedding_pallas(x, seq_len, freqs_row, *, tile_s_max=2048):
    """Returns (cos, sin), each of shape (1, 1, seq_len, dim), dtype x.dtype."""
    dim = freqs_row.shape[-1]
    out_dtype = x.dtype
    itemsize = jnp.dtype(out_dtype).itemsize

    # Keep 2 tables x 2 pipeline buffers of the output tile well inside the
    # default scoped VMEM on all chips (v5e: 16 MiB, v6e/v7x: 32 MiB).
    vmem_budget = 16 * 1024 * 1024
    rows_cap = max(8, ((vmem_budget // (4 * dim * itemsize)) // 8) * 8)
    tile_s = _choose_tile_s(seq_len, min(tile_s_max, rows_cap))
    grid = (pl.cdiv(seq_len, tile_s),)

    # Halved transcendental work only pays when dim//2 is itself a multiple of
    # 128 lanes; for dim == 128 both halves already share one vreg.
    use_half = (dim % 256 == 0)

    kernel = functools.partial(_rope_cache_kernel, tile_s=tile_s,
                               use_half=use_half)

    # TODO(synk): for head dims < 128 the (tile_s, dim) out block degrades to
    # masked partial stores; folding several seq rows into the lane axis would
    # restore lane-dense stores, but LLaMA head dims used here are >= 128.
    cos, sin = pl.pallas_call(
        kernel,
        out_shape=(jax.ShapeDtypeStruct((seq_len, dim), out_dtype),
                   jax.ShapeDtypeStruct((seq_len, dim), out_dtype)),
        grid_spec=pltpu.PrefetchScalarGridSpec(
            num_scalar_prefetch=0,
            grid=grid,
            in_specs=[
                # Tiny constant row; constant (0, 0) index -> DMA'd once.
                pl.BlockSpec((1, dim), lambda i: (0, 0)),
            ],
            out_specs=[
                # Partial last block (seq_len % tile_s != 0) is clipped by
                # Pallas on writeback -> no pad + slice HBM round trip.
                pl.BlockSpec((tile_s, dim), lambda i: (i, 0)),
                pl.BlockSpec((tile_s, dim), lambda i: (i, 0)),
            ],
        ),
        compiler_params=pltpu.CompilerParams(
            dimension_semantics=("parallel",)),
    )(freqs_row)

    # Leading (1, 1) dims are a metadata-only reshape (no data movement).
    return cos[None, None, :, :], sin[None, None, :, :]


# --------------------------------------------------------------------------
# Pure-JAX reference (mirrors the PyTorch module exactly)
# --------------------------------------------------------------------------
def rotary_embedding_reference(x, seq_len, dim, base=10000.0):
    inv_freq = 1.0 / (base ** (jnp.arange(0, dim, 2, dtype=jnp.float32) / dim))
    t = jnp.arange(seq_len, dtype=jnp.float32)
    freqs = jnp.einsum("i,j->ij", t, inv_freq)
    emb = jnp.concatenate([freqs, freqs], axis=-1)
    cos = jnp.cos(emb)[None, None, :, :].astype(x.dtype)
    sin = jnp.sin(emb)[None, None, :, :].astype(x.dtype)
    return cos, sin


if __name__ == "__main__":
    key = jax.random.PRNGKey(0)
    base = 10000.0
    ok = True

    # --- Case 1: LLaMA-like head_dim=128, fp32, single tile ------------------
    dim = 128
    B, H, S = 2, 4, 16
    x = jax.random.normal(key, (B, H, S, dim), jnp.float32)
    freqs_row = make_rotary_freqs(dim, base)

    cos, sin = rotary_embedding_pallas(x, S, freqs_row)
    cos = jax.block_until_ready(cos)
    sin = jax.block_until_ready(sin)
    cos_ref, sin_ref = rotary_embedding_reference(x, S, dim, base)
    ok &= bool(jnp.allclose(cos, cos_ref, atol=1e-5, rtol=1e-5))
    ok &= bool(jnp.allclose(sin, sin_ref, atol=1e-5, rtol=1e-5))
    ok &= cos.shape == (1, 1, S, dim) and sin.shape == (1, 1, S, dim)

    # --- Case 2: non-divisible seq_len + bf16 (partial block + cast) ---------
    S2 = 40
    x2 = jax.random.normal(key, (1, 2, S2, dim), jnp.bfloat16)
    cos2, sin2 = rotary_embedding_pallas(x2, S2, freqs_row)
    cos2 = jax.block_until_ready(cos2)
    sin2 = jax.block_until_ready(sin2)
    cos2_ref, sin2_ref = rotary_embedding_reference(x2, S2, dim, base)
    ok &= bool(jnp.allclose(cos2.astype(jnp.float32),
                            cos2_ref.astype(jnp.float32), atol=2e-2))
    ok &= bool(jnp.allclose(sin2.astype(jnp.float32),
                            sin2_ref.astype(jnp.float32), atol=2e-2))
    ok &= cos2.dtype == jnp.bfloat16 and cos2.shape == (1, 1, S2, dim)

    # --- Case 3: dim=256 exercises the half-compute / dual-half-store path ---
    dim3, S3 = 256, 24
    x3 = jax.random.normal(key, (1, 2, S3, dim3), jnp.float32)
    freqs_row3 = make_rotary_freqs(dim3, base)
    cos3, sin3 = rotary_embedding_pallas(x3, S3, freqs_row3)
    cos3 = jax.block_until_ready(cos3)
    sin3 = jax.block_until_ready(sin3)
    cos3_ref, sin3_ref = rotary_embedding_reference(x3, S3, dim3, base)
    ok &= bool(jnp.allclose(cos3, cos3_ref, atol=1e-5, rtol=1e-5))
    ok &= bool(jnp.allclose(sin3, sin3_ref, atol=1e-5, rtol=1e-5))
    ok &= cos3.shape == (1, 1, S3, dim3) and sin3.shape == (1, 1, S3, dim3)

    if ok:
        print("KERNEL_OK")
    else:
        print("MISMATCH")
</pallas_src>

<mosaic_0001>
module attributes {stable_mosaic.version = 11 : i64} {
  func.func @_rope_cache_kernel(%arg0: i32, %arg1: memref<1x128xf32, #tpu.memory_space<vmem>>, %arg2: memref<16x128xf32, #tpu.memory_space<vmem>>, %arg3: memref<16x128xf32, #tpu.memory_space<vmem>>) attributes {dimension_semantics = [#tpu.dimension_semantics<parallel>], iteration_bounds = array<i64: 1>, scalar_prefetch = 0 : i64, scratch_operands = 0 : i64, tpu.core_type = #tpu.core_type<tc>, window_params = [{pipeline_mode = #tpu.pipeline_mode<synchronous>, transform_indices = @transform_0, window_bounds = array<i64: 1, 128>}, {transform_indices = @transform_1, window_bounds = array<i64: 16, 128>}, {transform_indices = @transform_2, window_bounds = array<i64: 16, 128>}]} {
    %c0 = arith.constant 0 : index
    %c0_0 = arith.constant 0 : index
    %0 = vector.load %arg1[%c0, %c0_0] : memref<1x128xf32, #tpu.memory_space<vmem>>, vector<1x128xf32>
    %1 = tpu.iota {dimensions = array<i32: 0>} : vector<16x128xi32>
    %c16_i32 = arith.constant 16 : i32
    %2 = arith.muli %arg0, %c16_i32 : i32
    %3 = vector.broadcast %2 : i32 to vector<16x128xi32>
    %4 = arith.addi %1, %3 : vector<16x128xi32>
    %5 = arith.sitofp %4 : vector<16x128xi32> to vector<16x128xf32>
    %6 = vector.broadcast %0 : vector<1x128xf32> to vector<16x128xf32>
    %7 = arith.mulf %5, %6 : vector<16x128xf32>
    %8 = math.cos %7 : vector<16x128xf32>
    %9 = math.sin %7 : vector<16x128xf32>
    %c0_1 = arith.constant 0 : index
    %c0_2 = arith.constant 0 : index
    %10 = vector.load %arg2[%c0_1, %c0_2] : memref<16x128xf32, #tpu.memory_space<vmem>>, vector<16x128xf32>
    tpu.vector_store %arg2[%c0_1, %c0_2], %8 {strides = array<i32>} : memref<16x128xf32, #tpu.memory_space<vmem>>, vector<16x128xf32>,
    %c0_3 = arith.constant 0 : index
    %c0_4 = arith.constant 0 : index
    %11 = vector.load %arg3[%c0_3, %c0_4] : memref<16x128xf32, #tpu.memory_space<vmem>>, vector<16x128xf32>
    tpu.vector_store %arg3[%c0_3, %c0_4], %9 {strides = array<i32>} : memref<16x128xf32, #tpu.memory_space<vmem>>, vector<16x128xf32>,
    return
  }
  func.func @transform_0(%arg0: i32) -> (i32, i32) {
    %c0_i32 = arith.constant 0 : i32
    %c0_i32_0 = arith.constant 0 : i32
    %c0_i32_1 = arith.constant 0 : i32
    return %c0_i32, %c0_i32_0 : i32, i32
  }
  func.func @transform_1(%arg0: i32) -> (i32, i32) {
    %c0_i32 = arith.constant 0 : i32
    %c0_i32_0 = arith.constant 0 : i32
    return %arg0, %c0_i32 : i32, i32
  }
  func.func @transform_2(%arg0: i32) -> (i32, i32) {
    %c0_i32 = arith.constant 0 : i32
    %c0_i32_0 = arith.constant 0 : i32
    return %arg0, %c0_i32 : i32, i32
  }
}

</mosaic_0001>

<bundles_post_ra>
// kernel: tpu_custom_call.1
= control target key start
LH: loop header
LB: loop body
LE: loop exit
PB: predicated region body
PF: predicated region fallthrough
CT: control target
= control target key end

     0   :  { %8 = vsyncpa [#allocation3], 0  ;;  %s748_s0 = inlined_call_operand.hbm [shape: f32[1,128], index: 0, kind: input, shape index: {}]   ;;  %s749_s1 = inlined_call_operand.hbm [shape: f32[16,128], index: 1, kind: output, shape index: {0}]   ;;  %s750_s2 = inlined_call_operand.hbm [shape: f32[16,128], index: 2, kind: output, shape index: {1}]  }
   0x1   :  { %9 = vsyncpa [#allocation4], 0 }
   0x2   :  { %10 = vsyncpa [#allocation7], 0  ;;  %s609_s9 = smov [#allocation2]   ;;  %s537_s13 = scalar_lea.hbm %s748_s0, 16 }
   0x3   :  { %s17_s10 = sshll.u32 %s609_s9, 4  ;;  %p538_p0 = scmp.ne.s32.totalorder %s748_s0, %s537_s13  ;;  %s18_s10 = int_to_ptr.vmem [resolvable:$true] %s17_s10 }
   0x4   :  { %p541_p1 = scmp.lt.u32.totalorder %s537_s13, %s748_s0 }
   0x6   :  { %p543_p2 = pnand %p541_p1, %p538_p0 }
   0x8   :  { %546 = shalt.err (!%p543_p2)
}
   0x9   :  { %s547_s18 = scalar_lea.vmem %s18_s10, 16  ;;  %s551_s19 = scalar_lea.vmem %s18_s10, 32 }
   0xa   :  { %p548_p3 = scmp.ne.s32.totalorder %s18_s10, %s547_s18  ;;  %p552_p4 = scmp.lt.s32.totalorder %s18_s10, %s18_s10 }
   0xb   :  { %p553_p5 = scmp.lt.s32.totalorder %s551_s19, %s547_s18 }
   0xd   :  { %p554_p6 = por %p553_p5, %p552_p4 }
   0xf   :  { %p555_p7 = pnand %p554_p6, %p548_p3 }
  0x11   :  { %558 = shalt.err (!%p555_p7)
}
  0x12   :  { %20 = dma.hbm_to_vmem [thread:$0]  %s748_s0, 16, %s18_s10, [#allocation3]  }
  0x13   :  { %603 = dma.done.wait [#allocation3], 16  }
  0x14   :  { %604 = vsyncadd [#allocation3], 4294967280  ;;  %v25_v0 = vlaneseq  ;;  %v493_v5 = vld [vmem:[#allocation2] ss:$0 sm:$0xff]  ;;  %v610_v30 = vmov 683565275  }
  0x15   :  { %v611_v32 = vmov 2475754826   ;;  %v612_v34 = vmov 2131351028   ;;  %v613_v36 = vmov 2102212464  }
  0x16   :  { %v26_v1 = vshrl.u32 %v25_v0, 7  ;;  %v614_v38 = vmov 920167782   ;;  %v615_v46 = vmov 1326507024   ;;  %s616_s0 = smov [#allocation5]  }
  0x17   :  { %s465_s22 = sshll.u32 %s616_s0, 4  ;;  %s617_s23 = smov [#allocation6]   ;;  %s466_s22 = int_to_ptr.vmem [resolvable:$true] %s465_s22 }
  0x18   :  { %v32_v2 = vcvt.s32.f32 %v26_v1  ;;  %v27_v3 = vadd.s32 8, %v26_v1  ;;  %s477_s24 = sshll.u32 %s617_s23, 4  ;;  %s559_s25 = scalar_lea.vmem %s466_s22, 256  ;;  %s717_s24 = int_to_ptr.vmem [resolvable:$true] %s477_s24 }
  0x19   :  { %p560_p8 = scmp.ne.s32.totalorder %s466_s22, %s559_s25  ;;  %p564_p9 = scmp.lt.s32.totalorder %s466_s22, %s466_s22 }
  0x1a   :  { %v33_v4 = vcvt.s32.f32 %v27_v3  ;;  %v647_v6 = vmul.f32 %v493_v5, %v32_v2  ;;  %p565_p10 = scmp.lt.s32.totalorder %s559_s25, %s559_s25 }
  0x1c   :  { %v649_v7 = vmul.f32 %v493_v5, %v33_v4  ;;  %v42_v8 = vand.u32 2147483647, %v647_v6  ;;  %v45_v9 = vand.u32 2139095040, %v647_v6  ;;  %vm44_vm14 = vcmp.lt.s32.totalorder %v647_v6, 0  ;;  %p566_p11 = por %p565_p10, %p564_p9 }
  0x1e   :  { %v145_v10 = vand.u32 2147483647, %v649_v7  ;;  %v148_v11 = vand.u32 2139095040, %v649_v7  ;;  %v46_v12 = vshrl.u32 %v45_v9, 23  ;;  %v49_v13 = vand.u32 8388607, %v42_v8  ;;  %p567_p12 = pnand %p566_p11, %p560_p8 }
  0x1f   :  { %vm43_vm15 = vcmp.le.f32.partialorder %v42_v8, 0.7853982 }
  0x20   :  { %v149_v14 = vshrl.u32 %v148_v11, 23  ;;  %v152_v15 = vand.u32 8388607, %v145_v10  ;;  %v494_v16 = vadd.s32 4294967169, %v46_v12  ;;  %v50_v19 = vor.u32 8388608, %v49_v13 }
  0x22   :  { %v498_v17 = vadd.s32 4294967169, %v149_v14  ;;  %v52_v18 = vadd.s32 1, %v494_v16  ;;  %v153_v20 = vor.u32 8388608, %v152_v15  ;;  %v659_v26 = vshll.u32 %v50_v19, 8 }
  0x24   :  { %v155_v21 = vadd.s32 1, %v498_v17  ;;  %vm53_vm0 = vcmp.gt.s32.totalorder %v52_v18, 0  ;;  %v661_v28 = vshll.u32 %v153_v20, 8 }
  0x25   :  { %v54_v22 = vsel %vm53_vm0, %v52_v18, 0  ;;  %vm147_vm0 = vcmp.lt.s32.totalorder %v649_v7, 0 }
  0x26   :  { %vm156_vm1 = vcmp.gt.s32.totalorder %v155_v21, 0  ;;  %v55_v23 = vshrl.u32 %v54_v22, 5  ;;  %v56_v24 = vand.u32 31, %v54_v22 }
  0x27   :  { %v157_v25 = vsel %vm156_vm1, %v155_v21, 0  ;;  %vm146_vm1 = vcmp.le.f32.partialorder %v145_v10, 0.7853982 }
  0x28   :  { %v159_v27 = vand.u32 31, %v157_v25  ;;  %v57_v29 = vsub.s32 32, %v56_v24  ;;  %v59_v31 = vshll.u32 %v610_v30, %v56_v24  ;;  %v62_v33 = vshll.u32 %v611_v32, %v56_v24 }
  0x29   :  { %v65_v35 = vshll.u32 %v612_v34, %v56_v24  ;;  %v68_v37 = vshll.u32 %v613_v36, %v56_v24  ;;  %v71_v39 = vshll.u32 %v614_v38, %v56_v24  ;;  %vm74_vm2 = vcmp.lt.s32.totalorder %v55_v23, 1 }
  0x2a   :  { %v663_v40 = vshrl.u32 %v157_v25, 5  ;;  %v58_v41 = vshrl.u32 %v610_v30, %v57_v29  ;;  %v60_v42 = vshrl.u32 %v611_v32, %v57_v29  ;;  %v63_v43 = vshrl.u32 %v612_v34, %v57_v29 }
  0x2b   :  { %v66_v44 = vshrl.u32 %v613_v36, %v57_v29  ;;  %v69_v45 = vshrl.u32 %v614_v38, %v57_v29  ;;  %v72_v47 = vshrl.u32 %v615_v46, %v57_v29  ;;  %vm75_vm3 = vcmp.lt.s32.totalorder %v55_v23, 2 }
  0x2c   :  { %vm77_vm4 = vcmp.lt.s32.totalorder %v55_v23, 4  ;;  %v61_v48 = vor.u32 %v60_v42, %v59_v31  ;;  %v64_v49 = vor.u32 %v63_v43, %v62_v33  ;;  %v160_v51 = vsub.s32 32, %v159_v27 }
  0x2d   :  { %v67_v50 = vor.u32 %v66_v44, %v65_v35  ;;  %v70_v52 = vor.u32 %v69_v45, %v68_v37  ;;  %v73_v53 = vor.u32 %v72_v47, %v71_v39  ;;  %vm76_vm5 = vcmp.lt.s32.totalorder %v55_v23, 3 }
  0x2e   :  { %v162_v54 = vshll.u32 %v610_v30, %v159_v27  ;;  %v78_v55 = vsel %vm74_vm2, %v58_v41, %v61_v48  ;;  %v82_v57 = vsel %vm74_vm2, %v61_v48, %v64_v49  ;;  %v165_v62 = vshll.u32 %v611_v32, %v159_v27 }
  0x2f   :  { %v79_v56 = vsel %vm77_vm4, %v67_v50, 2102212464  ;;  %v86_v58 = vsel %vm74_vm2, %v64_v49, %v67_v50  ;;  %v83_v60 = vsel %vm77_vm4, %v70_v52, 920167782  ;;  %v87_v61 = vsel %vm77_vm4, %v73_v53, 1326507024 }
  0x30   :  { %v80_v59 = vsel %vm76_vm5, %v64_v49, %v79_v56  ;;  %v84_v63 = vsel %vm76_vm5, %v67_v50, %v83_v60  ;;  %v88_v0 = vsel %vm76_vm5, %v70_v52, %v87_v61  ;;  %v161_v1 = vshrl.u32 %v610_v30, %v160_v51 }
  0x31   :  { %v163_v2 = vshrl.u32 %v611_v32, %v160_v51  ;;  %v81_v3 = vsel %vm75_vm3, %v78_v55, %v80_v59  ;;  %v85_v4 = vsel %vm75_vm3, %v82_v57, %v84_v63  ;;  %v89_v5 = vsel %vm75_vm3, %v86_v58, %v88_v0 }
  0x32   :  { %v166_v9 = vshrl.u32 %v612_v34, %v160_v51  ;;  %v672_v11 = vmul.u32.u64.low %v659_v26, %v89_v5  ;;  %v673_v12 = vmul.u32.u64.high %v659_v26, %v89_v5, %v672_v11  ;;  %v168_v17 = vshll.u32 %v612_v34, %v159_v27 }
  0x33   :  { %v676_v13 = vmul.u32.u64.low %v659_v26, %v85_v4  ;;  %v677_v14 = vmul.u32.u64.high %v659_v26, %v85_v4, %v676_v13  ;;  %v164_v15 = vor.u32 %v163_v2, %v162_v54  ;;  %v169_v18 = vshrl.u32 %v613_v36, %v160_v51 }
  0x34   :  { %v167_v16 = vor.u32 %v166_v9, %v165_v62  ;;  %v171_v19 = vshll.u32 %v613_v36, %v159_v27  ;;  %v172_v20 = vshrl.u32 %v614_v38, %v160_v51  ;;  %v174_v21 = vshll.u32 %v614_v38, %v159_v27 }
  0x35   :  { %v175_v22 = vshrl.u32 %v615_v46, %v160_v51  ;;  %v97_v23 = vmul.u32 %v659_v26, %v81_v3  ;;  %v170_v24 = vor.u32 %v169_v18, %v168_v17  ;;  %vm177_vm6 = vcmp.lt.s32.totalorder %v663_v40, 1 }
  0x36   :  { %vm178_vm7 = vcmp.lt.s32.totalorder %v663_v40, 2  ;;  %vm99_vm8 = vc.u32 %v673_v12, %v676_v13  ;;  %v100_v25 = vadd.s32 1, %v677_v14  ;;  %v173_v29 = vor.u32 %v172_v20, %v171_v19 }
  0x37   :  { %vm179_vm9 = vcmp.lt.s32.totalorder %v663_v40, 3  ;;  %v176_v30 = vor.u32 %v175_v22, %v174_v21  ;;  %vm180_vm10 = vcmp.lt.s32.totalorder %v663_v40, 4  ;;  %v181_v31 = vsel %vm177_vm6, %v161_v1, %v164_v15 }
  0x38   :  { %v185_v27 = vsel %vm177_vm6, %v164_v15, %v167_v16  ;;  %v101_v32 = vsel %vm99_vm8, %v100_v25, %v677_v14  ;;  %v182_v26 = vsel %vm180_vm10, %v170_v24, 2102212464  ;;  %v186_v33 = vsel %vm180_vm10, %v173_v29, 920167782 }
  0x39   :  { %v189_v34 = vsel %vm177_vm6, %v167_v16, %v170_v24  ;;  %v102_v35 = vadd.s32 %v101_v32, %v97_v23  ;;  %v183_v36 = vsel %vm179_vm9, %v167_v16, %v182_v26  ;;  %v187_v37 = vsel %vm179_vm9, %v170_v24, %v186_v33 }
  0x3a   :  { %v190_v38 = vsel %vm180_vm10, %v176_v30, 1326507024  ;;  %v184_v39 = vsel %vm178_vm7, %v181_v31, %v183_v36  ;;  %v188_v41 = vsel %vm178_vm7, %v185_v27, %v187_v37  ;;  %v98_v63 = vadd.s32 %v676_v13, %v673_v12 }
  0x3b   :  { %v191_v42 = vsel %vm179_vm9, %v173_v29, %v190_v38  ;;  %v103_v43 = vadd.s32 536870912, %v102_v35  ;;  %v694_v45 = vmul.u32.u64.low %v661_v28, %v188_v41  ;;  %v695_v46 = vmul.u32.u64.high %v661_v28, %v188_v41, %v694_v45 }
  0x3c   :  { %v192_v44 = vsel %vm178_vm7, %v189_v34, %v191_v42  ;;  %v200_v50 = vmul.u32 %v661_v28, %v184_v39  ;;  %vm134_vm8 = vweird.f32 %v647_v6 }
  0x3d   :  { %v698_v47 = vmul.u32.u64.low %v661_v28, %v192_v44  ;;  %v699_v48 = vmul.u32.u64.high %v661_v28, %v192_v44, %v698_v47  ;;  %v104_v49 = vshrl.u32 %v103_v43, 30  ;;  %v203_v52 = vadd.s32 1, %v695_v46 }
  0x3f   :  { %v105_v51 = vshll.u32 %v104_v49, 30  ;;  %vm202_vm11 = vc.u32 %v699_v48, %v694_v45  ;;  %v201_v19 = vadd.s32 %v694_v45, %v699_v48  ;;  %v128_v12 = vsub.s32 4, %v104_v49 }
  0x40   :  { %v204_v40 = vsel %vm202_vm11, %v203_v52, %v695_v46 }
  0x41   :  { %v106_v53 = vsub.s32 %v102_v35, %v105_v51  ;;  %v205_v54 = vadd.s32 %v204_v40, %v200_v50  ;;  %v129_v31 = vsel %vm44_vm14, %v128_v12, %v104_v49 }
  0x42   :  { %v131_v34 = vsel %vm43_vm15, 0, %v129_v31 }
  0x43   :  { %v108_v55 = vsub.s32 0, %v106_v53  ;;  %v206_v56 = vadd.s32 536870912, %v205_v54  ;;  %v341_v39 = vadd.s32 3, %v131_v34  ;;  %v135_v43 = vand.u32 3, %v131_v34 }
  0x45   :  { %v495_v57 = vmin.u32 %v108_v55, %v106_v53  ;;  %v207_v58 = vshrl.u32 %v206_v56, 30  ;;  %v342_v44 = vand.u32 3, %v341_v39  ;;  %vm140_vm2 = vcmp.eq.s32.totalorder %v135_v43, 2 }
  0x46   :  { %vm137_vm4 = vcmp.eq.s32.totalorder %v135_v43, 0  ;;  %vm136_vm6 = vcmp.lt.s32.totalorder %v135_v43, 2 }
  0x47   :  { %v110_v59 = vclz %v495_v57  ;;  %v208_v60 = vshll.u32 %v207_v58, 30  ;;  %v231_v38 = vsub.s32 4, %v207_v58  ;;  %vm347_vm3 = vcmp.eq.s32.totalorder %v342_v44, 2 }
  0x48   :  { %vm344_vm5 = vcmp.eq.s32.totalorder %v342_v44, 0  ;;  %vm343_vm7 = vcmp.lt.s32.totalorder %v342_v44, 2 }
  0x49   :  { %v496_v61 = vadd.s32 4294967294, %v110_v59  ;;  %v209_v62 = vsub.s32 %v205_v54, %v208_v60  ;;  %v232_v42 = vsel %vm147_vm0, %v231_v38, %v207_v58 }
  0x4a   :  { %v234_v47 = vsel %vm146_vm1, 0, %v232_v42 }
  0x4b   :  { %vm497_vm12 = vcmp.lt.s32.totalorder %v496_v61, 0  ;;  %v211_v0 = vsub.s32 0, %v209_v62  ;;  %v445_v51 = vadd.s32 3, %v234_v47  ;;  %v238_v56 = vand.u32 3, %v234_v47 }
  0x4c   :  { %v113_v28 = vsel %vm497_vm12, 0, %v496_v61 }
  0x4d   :  { %v114_v1 = vsub.s32 32, %v113_v28  ;;  %v115_v2 = vshll.u32 %v106_v53, %v113_v28  ;;  %v118_v3 = vsub.s32 4294967266, %v113_v28  ;;  %v499_v4 = vmin.u32 %v211_v0, %v209_v62 }
  0x4e   :  { %v446_v58 = vand.u32 3, %v445_v51  ;;  %vm243_vm9 = vcmp.eq.s32.totalorder %v238_v56, 2  ;;  %vm240_vm11 = vcmp.eq.s32.totalorder %v238_v56, 0 }
  0x4f   :  { %v116_v5 = vshrl.u32 %v98_v63, %v114_v1  ;;  %v119_v9 = vadd.s32 127, %v118_v3  ;;  %v213_v11 = vclz %v499_v4 }
  0x50   :  { %vm451_vm10 = vcmp.eq.s32.totalorder %v446_v58, 2  ;;  %vm448_vm12 = vcmp.eq.s32.totalorder %v446_v58, 0 }
  0x51   :  { %v117_v14 = vor.u32 %v116_v5, %v115_v2  ;;  %v120_v15 = vshll.u32 %v119_v9, 23  ;;  %v500_v16 = vadd.s32 4294967294, %v213_v11 }
  0x53   :  { %v121_v17 = vor.u32 4788187, %v120_v15  ;;  %v124_v18 = vcvt.s32.f32 %v117_v14  ;;  %vm501_vm13 = vcmp.lt.s32.totalorder %v500_v16, 0 }
  0x54   :  { %v216_v13 = vsel %vm501_vm13, 0, %v500_v16  ;;  %vm239_vm13 = vcmp.lt.s32.totalorder %v238_v56, 2 }
  0x55   :  { %v122_v20 = vand.u32 2147483647, %v121_v17  ;;  %v217_v21 = vsub.s32 32, %v216_v13  ;;  %v218_v22 = vshll.u32 %v209_v62, %v216_v13  ;;  %v221_v23 = vsub.s32 4294967266, %v216_v13 }
  0x57   :  { %v125_v24 = vmul.f32 %v124_v18, %v122_v20  ;;  %v219_v25 = vshrl.u32 %v201_v19, %v217_v21  ;;  %v222_v29 = vadd.s32 127, %v221_v23 }
  0x59   :  { %v126_v30 = vxor.u32 2147483648, %v125_v24  ;;  %v220_v27 = vor.u32 %v219_v25, %v218_v22  ;;  %v223_v32 = vshll.u32 %v222_v29, 23 }
  0x5b   :  { %v127_v26 = vsel %vm44_vm14, %v126_v30, %v125_v24  ;;  %v224_v35 = vor.u32 4788187, %v223_v32  ;;  %v227_v36 = vcvt.s32.f32 %v220_v27  ;;  %vm447_vm14 = vcmp.lt.s32.totalorder %v446_v58, 2 }
  0x5c   :  { %v130_v33 = vsel %vm43_vm15, %v647_v6, %v127_v26  ;;  %vm237_vm15 = vweird.f32 %v649_v7 }
  0x5d   :  { %529 = vcosq.f32 %v130_v33  ;;  %v225_v37 = vand.u32 2147483647, %v224_v35 }
  0x5e   :  { %531 = vsinq.f32 %v130_v33 }
  0x5f   :  { %v228_v41 = vmul.f32 %v227_v36, %v225_v37 }
  0x61   :  { %v229_v8 = vxor.u32 2147483648, %v228_v41 }
  0x63   :  { %v230_v45 = vsel %vm147_vm0, %v229_v8, %v228_v41 }
  0x64   :  { %v233_v46 = vsel %vm146_vm1, %v649_v7, %v230_v45 }
  0x65   :  { %533 = vcosq.f32 %v233_v46 }
  0x66   :  { %535 = vsinq.f32 %v233_v46 }
  0x67   :  { %v530_v48 = vpop.eup %529 }
  0x68   :  { %v532_v49 = vpop.eup %531  ;;  %v141_v50 = vxor.u32 2147483648, %v530_v48 }
  0x69   :  { %v138_v10 = vxor.u32 2147483648, %v532_v49 }
  0x6a   :  { %v142_v52 = vsel %vm140_vm2, %v141_v50, %v532_v49  ;;  %v349_v53 = vsel %vm347_vm3, %v141_v50, %v532_v49 }
  0x6b   :  { %v139_v40 = vsel %vm137_vm4, %v530_v48, %v138_v10  ;;  %v346_v54 = vsel %vm344_vm5, %v530_v48, %v138_v10 }
  0x6c   :  { %v143_v55 = vsel %vm136_vm6, %v139_v40, %v142_v52  ;;  %v350_v57 = vsel %vm343_vm7, %v346_v54, %v349_v53 }
  0x6d   :  { %v144_v59 = vsel %vm134_vm8, nan, %v143_v55  ;;  %v351_v60 = vsel %vm134_vm8, nan, %v350_v57 }
  0x6e   :  { %456 = vst [vmem:[#allocation5] sm:$0xff] %v144_v59  ;;  %458 = vst [vmem:[#allocation6] sm:$0xff] %v351_v60 }
  0x6f   :  { %v534_v61 = vpop.eup %533 }
  0x70   :  { %v536_v62 = vpop.eup %535  ;;  %v244_v63 = vxor.u32 2147483648, %v534_v61 }
  0x71   :  { %v241_v6 = vxor.u32 2147483648, %v536_v62 }
  0x72   :  { %v245_v28 = vsel %vm243_vm9, %v244_v63, %v536_v62  ;;  %v453_v0 = vsel %vm451_vm10, %v244_v63, %v536_v62 }
  0x73   :  { %v242_v1 = vsel %vm240_vm11, %v534_v61, %v241_v6  ;;  %v450_v2 = vsel %vm448_vm12, %v534_v61, %v241_v6 }
  0x74   :  { %v246_v3 = vsel %vm239_vm13, %v242_v1, %v245_v28  ;;  %v454_v4 = vsel %vm447_vm14, %v450_v2, %v453_v0 }
  0x75   :  { %v247_v5 = vsel %vm237_vm15, nan, %v246_v3  ;;  %v455_v9 = vsel %vm237_vm15, nan, %v454_v4 }
  0x76   :  { %457 = vst [vmem:[#allocation5 + $0x8] sm:$0xff] %v247_v5  ;;  %459 = vst [vmem:[#allocation6 + $0x8] sm:$0xff] %v455_v9 }
  0x77   :  { %570 = shalt.err (!%p567_p12)
}
  0x78   :  { %s571_s28 = scalar_lea.hbm %s749_s1, 256 }
  0x79   :  { %p572_p13 = scmp.ne.s32.totalorder %s749_s1, %s571_s28  ;;  %p575_p0 = scmp.lt.u32.totalorder %s571_s28, %s749_s1 }
  0x7b   :  { %p577_p1 = pnand %p575_p0, %p572_p13 }
  0x7d   :  { %580 = shalt.err (!%p577_p1)
}
  0x7e   :  { %s618_s5 = smov 128   ;;  %s619_s6 = smov 8  }
  0x7f   :  { %471 = dma.vmem_to_hbm [thread:$0]  %s466_s22, 256, %s749_s1, [#allocation4], %s618_s5, %s618_s5, %s619_s6  }
  0x80   :  { %s581_s9 = scalar_lea.vmem %s717_s24, 256  ;;  %p586_p3 = scmp.lt.s32.totalorder %s717_s24, %s717_s24 }
  0x81   :  { %p582_p2 = scmp.ne.s32.totalorder %s717_s24, %s581_s9  ;;  %p587_p4 = scmp.lt.s32.totalorder %s581_s9, %s581_s9 }
  0x83   :  { %p588_p5 = por %p587_p4, %p586_p3 }
  0x85   :  { %p589_p6 = pnand %p588_p5, %p582_p2 }
  0x87   :  { %592 = shalt.err (!%p589_p6)
}
  0x88   :  { %s593_s12 = scalar_lea.hbm %s750_s2, 256 }
  0x89   :  { %p594_p7 = scmp.ne.s32.totalorder %s750_s2, %s593_s12  ;;  %p597_p8 = scmp.lt.u32.totalorder %s593_s12, %s750_s2 }
  0x8b   :  { %p599_p9 = pnand %p597_p8, %p594_p7 }
  0x8d   :  { %602 = shalt.err (!%p599_p9)
}
  0x8e   :  { %483 = dma.vmem_to_hbm [thread:$0]  %s717_s24, 256, %s750_s2, [#allocation7], %s618_s5, %s618_s5, %s619_s6  }
  0x8f   :  { %605 = dma.done.wait [#allocation4], 256  }
  0x90   :  { %606 = vsyncadd [#allocation4], 4294967040 }
  0x91   :  { %607 = dma.done.wait [#allocation7], 256  }
  0x92   :  { %608 = vsyncadd [#allocation7], 4294967040 }
  0x93   :  { %490 = vsyncpa [#allocation3], 1 }
  0x94   :  { %491 = vsyncpa [#allocation4], 1 }
  0x95   :  { %492 = vsyncpa [#allocation7], 1 }

</bundles_post_ra>
